<compile_context>
chip_gen: v7x
topology: tpu7x:2x2x1
jax: 0.10.0
libtpu: 0.0.40
codegen_flags: <defaults>
</compile_context>

<pallas_src>
import functools

import jax
import jax.numpy as jnp
from jax.experimental import pallas as pl
from jax.experimental.pallas import tpu as pltpu


def _round_up(x, m):
    return ((x + m - 1) // m) * m


def _default_num_groups():
    # One partial-sum group per TensorCore: v7x has 2 TCs/chip, v5e/v6e have 1.
    try:
        kind = jax.devices()[0].device_kind.lower()
    except Exception:
        return 1
    return 2 if "v7" in kind else 1


def _cwece_kernel(logits_ref, labels_ref, out_ref, acc_ref, *,
                  n_bins: int, n_valid: int):
    c, tile_n = logits_ref.shape
    n_strips = tile_n // 128
    gi = pl.program_id(0)            # "parallel" group axis (megacore split)
    ti = pl.program_id(1)            # "arbitrary" reduction axis (batch tiles)
    tiles_per_group = pl.num_programs(1)

    @pl.when(ti == 0)
    def _init():
        acc_ref[...] = jnp.zeros_like(acc_ref)

    # First batch column covered by this tile (unclamped, so fully-OOB
    # duplicate tiles from an uneven group split mask themselves to zero).
    col0 = (gi * tiles_per_group + ti) * tile_n

    # Hoisted loop invariants (broadcast_in_dim is not CSE'd by JAX).
    class_ids = jax.lax.broadcasted_iota(jnp.int32, (c, 128), 0)   # (C,128)
    lane_ids = jax.lax.broadcasted_iota(jnp.int32, (1, 128), 1)    # (1,128)

    def _accumulate(mask_tail):
        # Register-resident per-bin partials for this grid step: a tuple of
        # n_bins (C,128) f32 arrays carried through the strip loop (fits in
        # vregs); the VMEM accumulator is touched only once, after the loop.
        def strip(s, carry):
            off = pl.multiple_of(s * 128, 128)
            x = logits_ref[:, pl.ds(off, 128)].astype(jnp.float32)   # (C,128)
            lab = labels_ref[:, pl.ds(off, 128)]                     # (1,128)

            # Softmax over the class (sublane) axis; one reciprocal per column.
            m = jnp.max(x, axis=0, keepdims=True)
            e = jnp.exp(x - m)
            denom = jnp.sum(e, axis=0, keepdims=True)
            probs = e * (1.0 / denom)                                # (C,128)

            correct = (lab == class_ids).astype(jnp.float32)
            # A sample's contribution to (bin b, class j) is (conf - hit);
            # |.| and the 1/N scale are applied after the global reduction:
            #   gap * prop_in_bin == |sum conf - sum hit| / N
            diff = probs - correct

            # bin b = (b/n_bins, (b+1)/n_bins]  <=>  ceil(p*n_bins)-1 == b;
            # p == 0 maps to -1 (no bin), matching torch's .gt(lower) test.
            # Clamp so a prob an ulp above 1.0 still lands in the top bin.
            bidx = jnp.ceil(probs * float(n_bins)).astype(jnp.int32) - 1
            bidx = jnp.minimum(bidx, n_bins - 1)
            if mask_tail:
                col = col0 + off + lane_ids
                bidx = jnp.where(col < n_valid, bidx, -1)

            return tuple(carry[b] + jnp.where(bidx == b, diff, 0.0)
                         for b in range(n_bins))

        zero = jnp.zeros((c, 128), jnp.float32)
        parts = jax.lax.fori_loop(0, n_strips, strip,
                                  tuple(zero for _ in range(n_bins)))
        # Single flush per grid step into the persistent accumulator.
        for b in range(n_bins):
            acc_ref[b] = acc_ref[b] + parts[b]

    has_tail = (col0 + tile_n) > n_valid

    @pl.when(jnp.logical_not(has_tail))
    def _interior():
        _accumulate(mask_tail=False)

    @pl.when(has_tail)
    def _tail():
        _accumulate(mask_tail=True)

    # One XLU lane-reduction per group, in the epilogue of the reduction axis.
    @pl.when(ti == tiles_per_group - 1)
    def _finalize():
        out_ref[0] = jnp.sum(acc_ref[...], axis=-1)      # (n_bins, C) signed sums


def cwece_loss(logits, labels, n_bins: int = 15, avg: bool = True,
               *, num_groups=None, max_tile_n: int = 16384):
    """logits: (N, C), labels: (N,) int -> (1,) float32 (matches torch output)."""
    n, c = logits.shape

    # (C, N) layout: classes on sublanes, batch on the 128-lane axis; keep the
    # caller's dtype over the DMA (bf16 logits stay bf16).
    # TODO(synk): move this transpose into the kernel to drop the extra HBM pass.
    logits_t = jnp.transpose(logits)                       # (C, N)
    labels_row = labels.astype(jnp.int32).reshape(1, n)    # (1, N), free reshape

    max_tile_n = max(128, (max_tile_n // 128) * 128)
    tile_n = min(max_tile_n, _round_up(n, 128))

    tiles_total = pl.cdiv(n, tile_n)
    g = num_groups if num_groups is not None else _default_num_groups()
    g = g if (g > 1 and tiles_total >= g) else 1
    tiles_per_group = pl.cdiv(tiles_total, g)

    if g * tiles_per_group == tiles_total:
        col_map = lambda gi, ti: (0, gi * tiles_per_group + ti)
    else:
        # Uneven split: clamp duplicate trailing tiles onto the last real
        # block; the kernel's column mask zeroes their contribution.
        last = tiles_total - 1
        col_map = lambda gi, ti: (0, jnp.minimum(gi * tiles_per_group + ti, last))

    kernel = functools.partial(_cwece_kernel, n_bins=n_bins, n_valid=n)

    partials = pl.pallas_call(
        kernel,
        out_shape=jax.ShapeDtypeStruct((g, n_bins, c), jnp.float32),
        grid_spec=pltpu.PrefetchScalarGridSpec(
            num_scalar_prefetch=0,
            grid=(g, tiles_per_group),
            in_specs=[
                pl.BlockSpec((c, tile_n), col_map),    # logits (C, N) tile
                pl.BlockSpec((1, tile_n), col_map),    # labels (1, N) tile
            ],
            out_specs=pl.BlockSpec((1, n_bins, c), lambda gi, ti: (gi, 0, 0)),
            scratch_shapes=[pltpu.VMEM((n_bins, c, 128), jnp.float32)],
        ),
        # On v7x the leading axis should shard across the two TensorCores; if
        # plain "parallel" is observed not to split, switch to CORE_PARALLEL.
        compiler_params=pltpu.CompilerParams(
            dimension_semantics=("parallel", "arbitrary")),
    )(logits_t, labels_row)

    # Tiny JAX epilogue: combine per-group signed sums, then the gap math.
    per_bin_class = jnp.sum(partials, axis=0)              # (n_bins, C)
    total = jnp.sum(jnp.abs(per_bin_class)) / float(n)
    if avg:
        total = total / float(c)
    return total.reshape(1)


def _reference_cwece(logits, labels, n_bins=15, avg=True):
    """Pure-JAX reference mirroring the PyTorch loops, used for a sanity check."""
    probs = jax.nn.softmax(logits.astype(jnp.float32), axis=1)
    n, c = logits.shape
    boundaries = jnp.linspace(0.0, 1.0, n_bins + 1)
    total = 0.0
    for j in range(c):
        conf_j = probs[:, j]
        for b in range(n_bins):
            lo, hi = boundaries[b], boundaries[b + 1]
            in_bin = jnp.logical_and(conf_j > lo, conf_j <= hi)
            cnt = jnp.sum(in_bin.astype(jnp.float32))
            prop = cnt / n
            acc = jnp.sum((labels == j) & in_bin) / jnp.maximum(cnt, 1.0)
            conf = jnp.sum(jnp.where(in_bin, conf_j, 0.0)) / jnp.maximum(cnt, 1.0)
            total = total + jnp.where(cnt > 0, jnp.abs(conf - acc) * prop, 0.0)
    return (total / c if avg else total).reshape(1)


if __name__ == "__main__":
    key = jax.random.PRNGKey(0)
    k1, k2 = jax.random.split(key)

    # Small shapes consistent with the module: batch=64, num_classes=8.
    N, C = 64, 8
    logits = jax.random.normal(k1, (N, C), dtype=jnp.float32) * 2.0
    labels = jax.random.randint(k2, (N,), 0, C, dtype=jnp.int32)

    out = cwece_loss(logits, labels, n_bins=15, avg=True)
    jax.block_until_ready(out)
    ref = _reference_cwece(logits, labels, n_bins=15, avg=True)
    assert out.shape == (1,)
    assert jnp.allclose(out, ref, atol=1e-5), (out, ref)

    # Exercise the multi-tile reduction + tail-mask paths with a forced small tile.
    N2 = 300
    k3, k4 = jax.random.split(k1)
    logits2 = jax.random.normal(k3, (N2, C), dtype=jnp.float32) * 3.0
    labels2 = jax.random.randint(k4, (N2,), 0, C, dtype=jnp.int32)
    out2 = cwece_loss(logits2, labels2, n_bins=15, avg=True, max_tile_n=128)
    jax.block_until_ready(out2)
    ref2 = _reference_cwece(logits2, labels2, n_bins=15, avg=True)
    assert jnp.allclose(out2, ref2, atol=1e-5), (out2, ref2)

    print("KERNEL_OK")
</pallas_src>

<mosaic_0001>
module attributes {stable_mosaic.version = 11 : i64} {
  func.func @_cwece_kernel(%arg0: i32, %arg1: i32, %arg2: memref<8x128xf32, #tpu.memory_space<vmem>>, %arg3: memref<1x128xi32, #tpu.memory_space<vmem>>, %arg4: memref<1x15x8xf32, #tpu.memory_space<vmem>>, %arg5: memref<15x8x128xf32, #tpu.memory_space<vmem>>) attributes {dimension_semantics = [#tpu.dimension_semantics<parallel>, #tpu.dimension_semantics<arbitrary>], iteration_bounds = array<i64: 1, 1>, scalar_prefetch = 0 : i64, scratch_operands = 1 : i64, tpu.core_type = #tpu.core_type<tc>, window_params = [{transform_indices = @transform_0, window_bounds = array<i64: 8, 128>}, {transform_indices = @transform_1, window_bounds = array<i64: 1, 128>}, {transform_indices = @transform_2, window_bounds = array<i64: 1, 15, 8>}]} {
    %c0_i32 = arith.constant 0 : i32
    %0 = arith.cmpi eq, %arg1, %c0_i32 : i32
    %1 = arith.extui %0 : i1 to i32
    %c0_i32_0 = arith.constant 0 : i32
    %2 = arith.cmpi ne, %1, %c0_i32_0 : i32
    scf.if %2 {
      %cst = arith.constant 0.000000e+00 : f32
      %18 = vector.broadcast %cst : f32 to vector<15x8x128xf32>
      %c0 = arith.constant 0 : index
      %c0_6 = arith.constant 0 : index
      %c0_7 = arith.constant 0 : index
      %19 = vector.load %arg5[%c0, %c0_6, %c0_7] : memref<15x8x128xf32, #tpu.memory_space<vmem>>, vector<15x8x128xf32>
      tpu.vector_store %arg5[%c0, %c0_6, %c0_7], %18 {strides = array<i32>} : memref<15x8x128xf32, #tpu.memory_space<vmem>>, vector<15x8x128xf32>,
    } else {
    }
    %c1_i32 = arith.constant 1 : i32
    %3 = arith.muli %arg0, %c1_i32 : i32
    %4 = arith.addi %3, %arg1 : i32
    %c128_i32 = arith.constant 128 : i32
    %5 = arith.muli %4, %c128_i32 : i32
    %6 = tpu.iota {dimensions = array<i32: 0>} : vector<8x128xi32>
    %7 = tpu.iota {dimensions = array<i32: 1>} : vector<1x128xi32>
    %c128_i32_1 = arith.constant 128 : i32
    %8 = arith.addi %5, %c128_i32_1 : i32
    %c64_i32 = arith.constant 64 : i32
    %9 = arith.cmpi sgt, %8, %c64_i32 : i32
    %true = arith.constant true
    %10 = arith.xori %9, %true : i1
    %11 = arith.extui %10 : i1 to i32
    %c0_i32_2 = arith.constant 0 : i32
    %12 = arith.cmpi ne, %11, %c0_i32_2 : i32
    scf.if %12 {
      %cst = arith.constant 0.000000e+00 : f32
      %18 = vector.broadcast %cst : f32 to vector<8x128xf32>
      %c0_i32_6 = arith.constant 0 : i32
      %c128_i32_7 = arith.constant 128 : i32
      %19 = arith.muli %c0_i32_6, %c128_i32_7 : i32
      %20 = tpu.assume_multiple %19, 128 : i32
      %c0 = arith.constant 0 : index
      %21 = arith.index_cast %20 : i32 to index
      %22 = vector.load %arg2[%c0, %21] : memref<8x128xf32, #tpu.memory_space<vmem>>, vector<8x128xf32>
      %c0_8 = arith.constant 0 : index
      %23 = arith.index_cast %20 : i32 to index
      %24 = vector.load %arg3[%c0_8, %23] : memref<1x128xi32, #tpu.memory_space<vmem>>, vector<1x128xi32>
      %cst_9 = arith.constant dense<0xFF800000> : vector<128xf32>
      %25 = vector.multi_reduction <maximumf>, %22, %cst_9 [0] : vector<8x128xf32> to vector<128xf32>
      %26 = vector.shape_cast %25 : vector<128xf32> to vector<1x128xf32>
      %27 = vector.broadcast %26 : vector<1x128xf32> to vector<8x128xf32>
      %28 = arith.subf %22, %27 : vector<8x128xf32>
      %29 = math.exp %28 : vector<8x128xf32>
      %cst_10 = arith.constant dense<0.000000e+00> : vector<128xf32>
      %30 = vector.multi_reduction <add>, %29, %cst_10 [0] : vector<8x128xf32> to vector<128xf32>
      %31 = vector.shape_cast %30 : vector<128xf32> to vector<1x128xf32>
      %cst_11 = arith.constant 1.000000e+00 : f32
      %32 = vector.broadcast %cst_11 : f32 to vector<1x128xf32>
      %33 = arith.divf %32, %31 : vector<1x128xf32>
      %34 = vector.broadcast %33 : vector<1x128xf32> to vector<8x128xf32>
      %35 = arith.mulf %29, %34 : vector<8x128xf32>
      %36 = vector.broadcast %24 : vector<1x128xi32> to vector<8x128xi32>
      %37 = arith.cmpi eq, %36, %6 : vector<8x128xi32>
      %38 = arith.extui %37 : vector<8x128xi1> to vector<8x128xi32>
      %39 = arith.sitofp %38 : vector<8x128xi32> to vector<8x128xf32>
      %40 = arith.subf %35, %39 : vector<8x128xf32>
      %cst_12 = arith.constant 1.500000e+01 : f32
      %41 = vector.broadcast %cst_12 : f32 to vector<8x128xf32>
      %42 = arith.mulf %35, %41 : vector<8x128xf32>
      %43 = math.ceil %42 : vector<8x128xf32>
      %44 = arith.fptosi %43 : vector<8x128xf32> to vector<8x128xi32>
      %c1_i32_13 = arith.constant 1 : i32
      %45 = vector.broadcast %c1_i32_13 : i32 to vector<8x128xi32>
      %46 = arith.subi %44, %45 : vector<8x128xi32>
      %c14_i32 = arith.constant 14 : i32
      %47 = vector.broadcast %c14_i32 : i32 to vector<8x128xi32>
      %48 = arith.minsi %46, %47 : vector<8x128xi32>
      %c0_i32_14 = arith.constant 0 : i32
      %49 = vector.broadcast %c0_i32_14 : i32 to vector<8x128xi32>
      %50 = arith.cmpi eq, %48, %49 : vector<8x128xi32>
      %cst_15 = arith.constant 0.000000e+00 : f32
      %51 = vector.broadcast %cst_15 : f32 to vector<8x128xf32>
      %52 = arith.select %50, %40, %51 : vector<8x128xi1>, vector<8x128xf32>
      %53 = arith.addf %18, %52 : vector<8x128xf32>
      %c1_i32_16 = arith.constant 1 : i32
      %54 = vector.broadcast %c1_i32_16 : i32 to vector<8x128xi32>
      %55 = arith.cmpi eq, %48, %54 : vector<8x128xi32>
      %cst_17 = arith.constant 0.000000e+00 : f32
      %56 = vector.broadcast %cst_17 : f32 to vector<8x128xf32>
      %57 = arith.select %55, %40, %56 : vector<8x128xi1>, vector<8x128xf32>
      %58 = arith.addf %18, %57 : vector<8x128xf32>
      %c2_i32 = arith.constant 2 : i32
      %59 = vector.broadcast %c2_i32 : i32 to vector<8x128xi32>
      %60 = arith.cmpi eq, %48, %59 : vector<8x128xi32>
      %cst_18 = arith.constant 0.000000e+00 : f32
      %61 = vector.broadcast %cst_18 : f32 to vector<8x128xf32>
      %62 = arith.select %60, %40, %61 : vector<8x128xi1>, vector<8x128xf32>
      %63 = arith.addf %18, %62 : vector<8x128xf32>
      %c3_i32 = arith.constant 3 : i32
      %64 = vector.broadcast %c3_i32 : i32 to vector<8x128xi32>
      %65 = arith.cmpi eq, %48, %64 : vector<8x128xi32>
      %cst_19 = arith.constant 0.000000e+00 : f32
      %66 = vector.broadcast %cst_19 : f32 to vector<8x128xf32>
      %67 = arith.select %65, %40, %66 : vector<8x128xi1>, vector<8x128xf32>
      %68 = arith.addf %18, %67 : vector<8x128xf32>
      %c4_i32 = arith.constant 4 : i32
      %69 = vector.broadcast %c4_i32 : i32 to vector<8x128xi32>
      %70 = arith.cmpi eq, %48, %69 : vector<8x128xi32>
      %cst_20 = arith.constant 0.000000e+00 : f32
      %71 = vector.broadcast %cst_20 : f32 to vector<8x128xf32>
      %72 = arith.select %70, %40, %71 : vector<8x128xi1>, vector<8x128xf32>
      %73 = arith.addf %18, %72 : vector<8x128xf32>
      %c5_i32 = arith.constant 5 : i32
      %74 = vector.broadcast %c5_i32 : i32 to vector<8x128xi32>
      %75 = arith.cmpi eq, %48, %74 : vector<8x128xi32>
      %cst_21 = arith.constant 0.000000e+00 : f32
      %76 = vector.broadcast %cst_21 : f32 to vector<8x128xf32>
      %77 = arith.select %75, %40, %76 : vector<8x128xi1>, vector<8x128xf32>
      %78 = arith.addf %18, %77 : vector<8x128xf32>
      %c6_i32 = arith.constant 6 : i32
      %79 = vector.broadcast %c6_i32 : i32 to vector<8x128xi32>
      %80 = arith.cmpi eq, %48, %79 : vector<8x128xi32>
      %cst_22 = arith.constant 0.000000e+00 : f32
      %81 = vector.broadcast %cst_22 : f32 to vector<8x128xf32>
      %82 = arith.select %80, %40, %81 : vector<8x128xi1>, vector<8x128xf32>
      %83 = arith.addf %18, %82 : vector<8x128xf32>
      %c7_i32 = arith.constant 7 : i32
      %84 = vector.broadcast %c7_i32 : i32 to vector<8x128xi32>
      %85 = arith.cmpi eq, %48, %84 : vector<8x128xi32>
      %cst_23 = arith.constant 0.000000e+00 : f32
      %86 = vector.broadcast %cst_23 : f32 to vector<8x128xf32>
      %87 = arith.select %85, %40, %86 : vector<8x128xi1>, vector<8x128xf32>
      %88 = arith.addf %18, %87 : vector<8x128xf32>
      %c8_i32 = arith.constant 8 : i32
      %89 = vector.broadcast %c8_i32 : i32 to vector<8x128xi32>
      %90 = arith.cmpi eq, %48, %89 : vector<8x128xi32>
      %cst_24 = arith.constant 0.000000e+00 : f32
      %91 = vector.broadcast %cst_24 : f32 to vector<8x128xf32>
      %92 = arith.select %90, %40, %91 : vector<8x128xi1>, vector<8x128xf32>
      %93 = arith.addf %18, %92 : vector<8x128xf32>
      %c9_i32 = arith.constant 9 : i32
      %94 = vector.broadcast %c9_i32 : i32 to vector<8x128xi32>
      %95 = arith.cmpi eq, %48, %94 : vector<8x128xi32>
      %cst_25 = arith.constant 0.000000e+00 : f32
      %96 = vector.broadcast %cst_25 : f32 to vector<8x128xf32>
      %97 = arith.select %95, %40, %96 : vector<8x128xi1>, vector<8x128xf32>
      %98 = arith.addf %18, %97 : vector<8x128xf32>
      %c10_i32 = arith.constant 10 : i32
      %99 = vector.broadcast %c10_i32 : i32 to vector<8x128xi32>
      %100 = arith.cmpi eq, %48, %99 : vector<8x128xi32>
      %cst_26 = arith.constant 0.000000e+00 : f32
      %101 = vector.broadcast %cst_26 : f32 to vector<8x128xf32>
      %102 = arith.select %100, %40, %101 : vector<8x128xi1>, vector<8x128xf32>
      %103 = arith.addf %18, %102 : vector<8x128xf32>
      %c11_i32 = arith.constant 11 : i32
      %104 = vector.broadcast %c11_i32 : i32 to vector<8x128xi32>
      %105 = arith.cmpi eq, %48, %104 : vector<8x128xi32>
      %cst_27 = arith.constant 0.000000e+00 : f32
      %106 = vector.broadcast %cst_27 : f32 to vector<8x128xf32>
      %107 = arith.select %105, %40, %106 : vector<8x128xi1>, vector<8x128xf32>
      %108 = arith.addf %18, %107 : vector<8x128xf32>
      %c12_i32 = arith.constant 12 : i32
      %109 = vector.broadcast %c12_i32 : i32 to vector<8x128xi32>
      %110 = arith.cmpi eq, %48, %109 : vector<8x128xi32>
      %cst_28 = arith.constant 0.000000e+00 : f32
      %111 = vector.broadcast %cst_28 : f32 to vector<8x128xf32>
      %112 = arith.select %110, %40, %111 : vector<8x128xi1>, vector<8x128xf32>
      %113 = arith.addf %18, %112 : vector<8x128xf32>
      %c13_i32 = arith.constant 13 : i32
      %114 = vector.broadcast %c13_i32 : i32 to vector<8x128xi32>
      %115 = arith.cmpi eq, %48, %114 : vector<8x128xi32>
      %cst_29 = arith.constant 0.000000e+00 : f32
      %116 = vector.broadcast %cst_29 : f32 to vector<8x128xf32>
      %117 = arith.select %115, %40, %116 : vector<8x128xi1>, vector<8x128xf32>
      %118 = arith.addf %18, %117 : vector<8x128xf32>
      %c14_i32_30 = arith.constant 14 : i32
      %119 = vector.broadcast %c14_i32_30 : i32 to vector<8x128xi32>
      %120 = arith.cmpi eq, %48, %119 : vector<8x128xi32>
      %cst_31 = arith.constant 0.000000e+00 : f32
      %121 = vector.broadcast %cst_31 : f32 to vector<8x128xf32>
      %122 = arith.select %120, %40, %121 : vector<8x128xi1>, vector<8x128xf32>
      %123 = arith.addf %18, %122 : vector<8x128xf32>
      %c1_i32_32 = arith.constant 1 : i32
      %c0_33 = arith.constant 0 : index
      %c0_34 = arith.constant 0 : index
      %c0_35 = arith.constant 0 : index
      %124 = vector.load %arg5[%c0_33, %c0_34, %c0_35] : memref<15x8x128xf32, #tpu.memory_space<vmem>>, vector<1x8x128xf32>
      %125 = vector.shape_cast %124 : vector<1x8x128xf32> to vector<8x128xf32>
      %126 = arith.addf %125, %53 : vector<8x128xf32>
      %c0_36 = arith.constant 0 : index
      %c0_37 = arith.constant 0 : index
      %c0_38 = arith.constant 0 : index
      %127 = vector.load %arg5[%c0_36, %c0_37, %c0_38] : memref<15x8x128xf32, #tpu.memory_space<vmem>>, vector<1x8x128xf32>
      %128 = vector.shape_cast %127 : vector<1x8x128xf32> to vector<8x128xf32>
      %129 = vector.shape_cast %126 : vector<8x128xf32> to vector<1x8x128xf32>
      tpu.vector_store %arg5[%c0_36, %c0_37, %c0_38], %129 {strides = array<i32>} : memref<15x8x128xf32, #tpu.memory_space<vmem>>, vector<1x8x128xf32>,
      %c1 = arith.constant 1 : index
      %c0_39 = arith.constant 0 : index
      %c0_40 = arith.constant 0 : index
      %130 = vector.load %arg5[%c1, %c0_39, %c0_40] : memref<15x8x128xf32, #tpu.memory_space<vmem>>, vector<1x8x128xf32>
      %131 = vector.shape_cast %130 : vector<1x8x128xf32> to vector<8x128xf32>
      %132 = arith.addf %131, %58 : vector<8x128xf32>
      %c1_41 = arith.constant 1 : index
      %c0_42 = arith.constant 0 : index
      %c0_43 = arith.constant 0 : index
      %133 = vector.load %arg5[%c1_41, %c0_42, %c0_43] : memref<15x8x128xf32, #tpu.memory_space<vmem>>, vector<1x8x128xf32>
      %134 = vector.shape_cast %133 : vector<1x8x128xf32> to vector<8x128xf32>
      %135 = vector.shape_cast %132 : vector<8x128xf32> to vector<1x8x128xf32>
      tpu.vector_store %arg5[%c1_41, %c0_42, %c0_43], %135 {strides = array<i32>} : memref<15x8x128xf32, #tpu.memory_space<vmem>>, vector<1x8x128xf32>,
      %c2 = arith.constant 2 : index
      %c0_44 = arith.constant 0 : index
      %c0_45 = arith.constant 0 : index
      %136 = vector.load %arg5[%c2, %c0_44, %c0_45] : memref<15x8x128xf32, #tpu.memory_space<vmem>>, vector<1x8x128xf32>
      %137 = vector.shape_cast %136 : vector<1x8x128xf32> to vector<8x128xf32>
      %138 = arith.addf %137, %63 : vector<8x128xf32>
      %c2_46 = arith.constant 2 : index
      %c0_47 = arith.constant 0 : index
      %c0_48 = arith.constant 0 : index
      %139 = vector.load %arg5[%c2_46, %c0_47, %c0_48] : memref<15x8x128xf32, #tpu.memory_space<vmem>>, vector<1x8x128xf32>
      %140 = vector.shape_cast %139 : vector<1x8x128xf32> to vector<8x128xf32>
      %141 = vector.shape_cast %138 : vector<8x128xf32> to vector<1x8x128xf32>
      tpu.vector_store %arg5[%c2_46, %c0_47, %c0_48], %141 {strides = array<i32>} : memref<15x8x128xf32, #tpu.memory_space<vmem>>, vector<1x8x128xf32>,
      %c3 = arith.constant 3 : index
      %c0_49 = arith.constant 0 : index
      %c0_50 = arith.constant 0 : index
      %142 = vector.load %arg5[%c3, %c0_49, %c0_50] : memref<15x8x128xf32, #tpu.memory_space<vmem>>, vector<1x8x128xf32>
      %143 = vector.shape_cast %142 : vector<1x8x128xf32> to vector<8x128xf32>
      %144 = arith.addf %143, %68 : vector<8x128xf32>
      %c3_51 = arith.constant 3 : index
      %c0_52 = arith.constant 0 : index
      %c0_53 = arith.constant 0 : index
      %145 = vector.load %arg5[%c3_51, %c0_52, %c0_53] : memref<15x8x128xf32, #tpu.memory_space<vmem>>, vector<1x8x128xf32>
      %146 = vector.shape_cast %145 : vector<1x8x128xf32> to vector<8x128xf32>
      %147 = vector.shape_cast %144 : vector<8x128xf32> to vector<1x8x128xf32>
      tpu.vector_store %arg5[%c3_51, %c0_52, %c0_53], %147 {strides = array<i32>} : memref<15x8x128xf32, #tpu.memory_space<vmem>>, vector<1x8x128xf32>,
      %c4 = arith.constant 4 : index
      %c0_54 = arith.constant 0 : index
      %c0_55 = arith.constant 0 : index
      %148 = vector.load %arg5[%c4, %c0_54, %c0_55] : memref<15x8x128xf32, #tpu.memory_space<vmem>>, vector<1x8x128xf32>
      %149 = vector.shape_cast %148 : vector<1x8x128xf32> to vector<8x128xf32>
      %150 = arith.addf %149, %73 : vector<8x128xf32>
      %c4_56 = arith.constant 4 : index
      %c0_57 = arith.constant 0 : index
      %c0_58 = arith.constant 0 : index
      %151 = vector.load %arg5[%c4_56, %c0_57, %c0_58] : memref<15x8x128xf32, #tpu.memory_space<vmem>>, vector<1x8x128xf32>
      %152 = vector.shape_cast %151 : vector<1x8x128xf32> to vector<8x128xf32>
      %153 = vector.shape_cast %150 : vector<8x128xf32> to vector<1x8x128xf32>
      tpu.vector_store %arg5[%c4_56, %c0_57, %c0_58], %153 {strides = array<i32>} : memref<15x8x128xf32, #tpu.memory_space<vmem>>, vector<1x8x128xf32>,
      %c5 = arith.constant 5 : index
      %c0_59 = arith.constant 0 : index
      %c0_60 = arith.constant 0 : index
      %154 = vector.load %arg5[%c5, %c0_59, %c0_60] : memref<15x8x128xf32, #tpu.memory_space<vmem>>, vector<1x8x128xf32>
      %155 = vector.shape_cast %154 : vector<1x8x128xf32> to vector<8x128xf32>
      %156 = arith.addf %155, %78 : vector<8x128xf32>
      %c5_61 = arith.constant 5 : index
      %c0_62 = arith.constant 0 : index
      %c0_63 = arith.constant 0 : index
      %157 = vector.load %arg5[%c5_61, %c0_62, %c0_63] : memref<15x8x128xf32, #tpu.memory_space<vmem>>, vector<1x8x128xf32>
      %158 = vector.shape_cast %157 : vector<1x8x128xf32> to vector<8x128xf32>
      %159 = vector.shape_cast %156 : vector<8x128xf32> to vector<1x8x128xf32>
      tpu.vector_store %arg5[%c5_61, %c0_62, %c0_63], %159 {strides = array<i32>} : memref<15x8x128xf32, #tpu.memory_space<vmem>>, vector<1x8x128xf32>,
      %c6 = arith.constant 6 : index
      %c0_64 = arith.constant 0 : index
      %c0_65 = arith.constant 0 : index
      %160 = vector.load %arg5[%c6, %c0_64, %c0_65] : memref<15x8x128xf32, #tpu.memory_space<vmem>>, vector<1x8x128xf32>
      %161 = vector.shape_cast %160 : vector<1x8x128xf32> to vector<8x128xf32>
      %162 = arith.addf %161, %83 : vector<8x128xf32>
      %c6_66 = arith.constant 6 : index
      %c0_67 = arith.constant 0 : index
      %c0_68 = arith.constant 0 : index
      %163 = vector.load %arg5[%c6_66, %c0_67, %c0_68] : memref<15x8x128xf32, #tpu.memory_space<vmem>>, vector<1x8x128xf32>
      %164 = vector.shape_cast %163 : vector<1x8x128xf32> to vector<8x128xf32>
      %165 = vector.shape_cast %162 : vector<8x128xf32> to vector<1x8x128xf32>
      tpu.vector_store %arg5[%c6_66, %c0_67, %c0_68], %165 {strides = array<i32>} : memref<15x8x128xf32, #tpu.memory_space<vmem>>, vector<1x8x128xf32>,
      %c7 = arith.constant 7 : index
      %c0_69 = arith.constant 0 : index
      %c0_70 = arith.constant 0 : index
      %166 = vector.load %arg5[%c7, %c0_69, %c0_70] : memref<15x8x128xf32, #tpu.memory_space<vmem>>, vector<1x8x128xf32>
      %167 = vector.shape_cast %166 : vector<1x8x128xf32> to vector<8x128xf32>
      %168 = arith.addf %167, %88 : vector<8x128xf32>
      %c7_71 = arith.constant 7 : index
      %c0_72 = arith.constant 0 : index
      %c0_73 = arith.constant 0 : index
      %169 = vector.load %arg5[%c7_71, %c0_72, %c0_73] : memref<15x8x128xf32, #tpu.memory_space<vmem>>, vector<1x8x128xf32>
      %170 = vector.shape_cast %169 : vector<1x8x128xf32> to vector<8x128xf32>
      %171 = vector.shape_cast %168 : vector<8x128xf32> to vector<1x8x128xf32>
      tpu.vector_store %arg5[%c7_71, %c0_72, %c0_73], %171 {strides = array<i32>} : memref<15x8x128xf32, #tpu.memory_space<vmem>>, vector<1x8x128xf32>,
      %c8 = arith.constant 8 : index
      %c0_74 = arith.constant 0 : index
      %c0_75 = arith.constant 0 : index
      %172 = vector.load %arg5[%c8, %c0_74, %c0_75] : memref<15x8x128xf32, #tpu.memory_space<vmem>>, vector<1x8x128xf32>
      %173 = vector.shape_cast %172 : vector<1x8x128xf32> to vector<8x128xf32>
      %174 = arith.addf %173, %93 : vector<8x128xf32>
      %c8_76 = arith.constant 8 : index
      %c0_77 = arith.constant 0 : index
      %c0_78 = arith.constant 0 : index
      %175 = vector.load %arg5[%c8_76, %c0_77, %c0_78] : memref<15x8x128xf32, #tpu.memory_space<vmem>>, vector<1x8x128xf32>
      %176 = vector.shape_cast %175 : vector<1x8x128xf32> to vector<8x128xf32>
      %177 = vector.shape_cast %174 : vector<8x128xf32> to vector<1x8x128xf32>
      tpu.vector_store %arg5[%c8_76, %c0_77, %c0_78], %177 {strides = array<i32>} : memref<15x8x128xf32, #tpu.memory_space<vmem>>, vector<1x8x128xf32>,
      %c9 = arith.constant 9 : index
      %c0_79 = arith.constant 0 : index
      %c0_80 = arith.constant 0 : index
      %178 = vector.load %arg5[%c9, %c0_79, %c0_80] : memref<15x8x128xf32, #tpu.memory_space<vmem>>, vector<1x8x128xf32>
      %179 = vector.shape_cast %178 : vector<1x8x128xf32> to vector<8x128xf32>
      %180 = arith.addf %179, %98 : vector<8x128xf32>
      %c9_81 = arith.constant 9 : index
      %c0_82 = arith.constant 0 : index
      %c0_83 = arith.constant 0 : index
      %181 = vector.load %arg5[%c9_81, %c0_82, %c0_83] : memref<15x8x128xf32, #tpu.memory_space<vmem>>, vector<1x8x128xf32>
      %182 = vector.shape_cast %181 : vector<1x8x128xf32> to vector<8x128xf32>
      %183 = vector.shape_cast %180 : vector<8x128xf32> to vector<1x8x128xf32>
      tpu.vector_store %arg5[%c9_81, %c0_82, %c0_83], %183 {strides = array<i32>} : memref<15x8x128xf32, #tpu.memory_space<vmem>>, vector<1x8x128xf32>,
      %c10 = arith.constant 10 : index
      %c0_84 = arith.constant 0 : index
      %c0_85 = arith.constant 0 : index
      %184 = vector.load %arg5[%c10, %c0_84, %c0_85] : memref<15x8x128xf32, #tpu.memory_space<vmem>>, vector<1x8x128xf32>
      %185 = vector.shape_cast %184 : vector<1x8x128xf32> to vector<8x128xf32>
      %186 = arith.addf %185, %103 : vector<8x128xf32>
      %c10_86 = arith.constant 10 : index
      %c0_87 = arith.constant 0 : index
      %c0_88 = arith.constant 0 : index
      %187 = vector.load %arg5[%c10_86, %c0_87, %c0_88] : memref<15x8x128xf32, #tpu.memory_space<vmem>>, vector<1x8x128xf32>
      %188 = vector.shape_cast %187 : vector<1x8x128xf32> to vector<8x128xf32>
      %189 = vector.shape_cast %186 : vector<8x128xf32> to vector<1x8x128xf32>
      tpu.vector_store %arg5[%c10_86, %c0_87, %c0_88], %189 {strides = array<i32>} : memref<15x8x128xf32, #tpu.memory_space<vmem>>, vector<1x8x128xf32>,
      %c11 = arith.constant 11 : index
      %c0_89 = arith.constant 0 : index
      %c0_90 = arith.constant 0 : index
      %190 = vector.load %arg5[%c11, %c0_89, %c0_90] : memref<15x8x128xf32, #tpu.memory_space<vmem>>, vector<1x8x128xf32>
      %191 = vector.shape_cast %190 : vector<1x8x128xf32> to vector<8x128xf32>
      %192 = arith.addf %191, %108 : vector<8x128xf32>
      %c11_91 = arith.constant 11 : index
      %c0_92 = arith.constant 0 : index
      %c0_93 = arith.constant 0 : index
      %193 = vector.load %arg5[%c11_91, %c0_92, %c0_93] : memref<15x8x128xf32, #tpu.memory_space<vmem>>, vector<1x8x128xf32>
      %194 = vector.shape_cast %193 : vector<1x8x128xf32> to vector<8x128xf32>
      %195 = vector.shape_cast %192 : vector<8x128xf32> to vector<1x8x128xf32>
      tpu.vector_store %arg5[%c11_91, %c0_92, %c0_93], %195 {strides = array<i32>} : memref<15x8x128xf32, #tpu.memory_space<vmem>>, vector<1x8x128xf32>,
      %c12 = arith.constant 12 : index
      %c0_94 = arith.constant 0 : index
      %c0_95 = arith.constant 0 : index
      %196 = vector.load %arg5[%c12, %c0_94, %c0_95] : memref<15x8x128xf32, #tpu.memory_space<vmem>>, vector<1x8x128xf32>
      %197 = vector.shape_cast %196 : vector<1x8x128xf32> to vector<8x128xf32>
      %198 = arith.addf %197, %113 : vector<8x128xf32>
      %c12_96 = arith.constant 12 : index
      %c0_97 = arith.constant 0 : index
      %c0_98 = arith.constant 0 : index
      %199 = vector.load %arg5[%c12_96, %c0_97, %c0_98] : memref<15x8x128xf32, #tpu.memory_space<vmem>>, vector<1x8x128xf32>
      %200 = vector.shape_cast %199 : vector<1x8x128xf32> to vector<8x128xf32>
      %201 = vector.shape_cast %198 : vector<8x128xf32> to vector<1x8x128xf32>
      tpu.vector_store %arg5[%c12_96, %c0_97, %c0_98], %201 {strides = array<i32>} : memref<15x8x128xf32, #tpu.memory_space<vmem>>, vector<1x8x128xf32>,
      %c13 = arith.constant 13 : index
      %c0_99 = arith.constant 0 : index
      %c0_100 = arith.constant 0 : index
      %202 = vector.load %arg5[%c13, %c0_99, %c0_100] : memref<15x8x128xf32, #tpu.memory_space<vmem>>, vector<1x8x128xf32>
      %203 = vector.shape_cast %202 : vector<1x8x128xf32> to vector<8x128xf32>
      %204 = arith.addf %203, %118 : vector<8x128xf32>
      %c13_101 = arith.constant 13 : index
      %c0_102 = arith.constant 0 : index
      %c0_103 = arith.constant 0 : index
      %205 = vector.load %arg5[%c13_101, %c0_102, %c0_103] : memref<15x8x128xf32, #tpu.memory_space<vmem>>, vector<1x8x128xf32>
      %206 = vector.shape_cast %205 : vector<1x8x128xf32> to vector<8x128xf32>
      %207 = vector.shape_cast %204 : vector<8x128xf32> to vector<1x8x128xf32>
      tpu.vector_store %arg5[%c13_101, %c0_102, %c0_103], %207 {strides = array<i32>} : memref<15x8x128xf32, #tpu.memory_space<vmem>>, vector<1x8x128xf32>,
      %c14 = arith.constant 14 : index
      %c0_104 = arith.constant 0 : index
      %c0_105 = arith.constant 0 : index
      %208 = vector.load %arg5[%c14, %c0_104, %c0_105] : memref<15x8x128xf32, #tpu.memory_space<vmem>>, vector<1x8x128xf32>
      %209 = vector.shape_cast %208 : vector<1x8x128xf32> to vector<8x128xf32>
      %210 = arith.addf %209, %123 : vector<8x128xf32>
      %c14_106 = arith.constant 14 : index
      %c0_107 = arith.constant 0 : index
      %c0_108 = arith.constant 0 : index
      %211 = vector.load %arg5[%c14_106, %c0_107, %c0_108] : memref<15x8x128xf32, #tpu.memory_space<vmem>>, vector<1x8x128xf32>
      %212 = vector.shape_cast %211 : vector<1x8x128xf32> to vector<8x128xf32>
      %213 = vector.shape_cast %210 : vector<8x128xf32> to vector<1x8x128xf32>
      tpu.vector_store %arg5[%c14_106, %c0_107, %c0_108], %213 {strides = array<i32>} : memref<15x8x128xf32, #tpu.memory_space<vmem>>, vector<1x8x128xf32>,
    } else {
    }
    %13 = arith.extui %9 : i1 to i32
    %c0_i32_3 = arith.constant 0 : i32
    %14 = arith.cmpi ne, %13, %c0_i32_3 : i32
    scf.if %14 {
      %cst = arith.constant 0.000000e+00 : f32
      %18 = vector.broadcast %cst : f32 to vector<8x128xf32>
      %c0_i32_6 = arith.constant 0 : i32
      %c128_i32_7 = arith.constant 128 : i32
      %19 = arith.muli %c0_i32_6, %c128_i32_7 : i32
      %20 = tpu.assume_multiple %19, 128 : i32
      %c0 = arith.constant 0 : index
      %21 = arith.index_cast %20 : i32 to index
      %22 = vector.load %arg2[%c0, %21] : memref<8x128xf32, #tpu.memory_space<vmem>>, vector<8x128xf32>
      %c0_8 = arith.constant 0 : index
      %23 = arith.index_cast %20 : i32 to index
      %24 = vector.load %arg3[%c0_8, %23] : memref<1x128xi32, #tpu.memory_space<vmem>>, vector<1x128xi32>
      %cst_9 = arith.constant dense<0xFF800000> : vector<128xf32>
      %25 = vector.multi_reduction <maximumf>, %22, %cst_9 [0] : vector<8x128xf32> to vector<128xf32>
      %26 = vector.shape_cast %25 : vector<128xf32> to vector<1x128xf32>
      %27 = vector.broadcast %26 : vector<1x128xf32> to vector<8x128xf32>
      %28 = arith.subf %22, %27 : vector<8x128xf32>
      %29 = math.exp %28 : vector<8x128xf32>
      %cst_10 = arith.constant dense<0.000000e+00> : vector<128xf32>
      %30 = vector.multi_reduction <add>, %29, %cst_10 [0] : vector<8x128xf32> to vector<128xf32>
      %31 = vector.shape_cast %30 : vector<128xf32> to vector<1x128xf32>
      %cst_11 = arith.constant 1.000000e+00 : f32
      %32 = vector.broadcast %cst_11 : f32 to vector<1x128xf32>
      %33 = arith.divf %32, %31 : vector<1x128xf32>
      %34 = vector.broadcast %33 : vector<1x128xf32> to vector<8x128xf32>
      %35 = arith.mulf %29, %34 : vector<8x128xf32>
      %36 = vector.broadcast %24 : vector<1x128xi32> to vector<8x128xi32>
      %37 = arith.cmpi eq, %36, %6 : vector<8x128xi32>
      %38 = arith.extui %37 : vector<8x128xi1> to vector<8x128xi32>
      %39 = arith.sitofp %38 : vector<8x128xi32> to vector<8x128xf32>
      %40 = arith.subf %35, %39 : vector<8x128xf32>
      %cst_12 = arith.constant 1.500000e+01 : f32
      %41 = vector.broadcast %cst_12 : f32 to vector<8x128xf32>
      %42 = arith.mulf %35, %41 : vector<8x128xf32>
      %43 = math.ceil %42 : vector<8x128xf32>
      %44 = arith.fptosi %43 : vector<8x128xf32> to vector<8x128xi32>
      %c1_i32_13 = arith.constant 1 : i32
      %45 = vector.broadcast %c1_i32_13 : i32 to vector<8x128xi32>
      %46 = arith.subi %44, %45 : vector<8x128xi32>
      %c14_i32 = arith.constant 14 : i32
      %47 = vector.broadcast %c14_i32 : i32 to vector<8x128xi32>
      %48 = arith.minsi %46, %47 : vector<8x128xi32>
      %49 = arith.addi %5, %20 : i32
      %50 = vector.broadcast %49 : i32 to vector<1x128xi32>
      %51 = arith.addi %50, %7 : vector<1x128xi32>
      %c64_i32_14 = arith.constant 64 : i32
      %52 = vector.broadcast %c64_i32_14 : i32 to vector<1x128xi32>
      %53 = arith.cmpi slt, %51, %52 : vector<1x128xi32>
      %c-1_i32 = arith.constant -1 : i32
      %54 = vector.shape_cast %53 : vector<1x128xi1> to vector<1x128xi1>
      %55 = vector.broadcast %54 : vector<1x128xi1> to vector<8x128xi1>
      %56 = vector.broadcast %c-1_i32 : i32 to vector<8x128xi32>
      %57 = arith.select %55, %48, %56 : vector<8x128xi1>, vector<8x128xi32>
      %c0_i32_15 = arith.constant 0 : i32
      %58 = vector.broadcast %c0_i32_15 : i32 to vector<8x128xi32>
      %59 = arith.cmpi eq, %57, %58 : vector<8x128xi32>
      %cst_16 = arith.constant 0.000000e+00 : f32
      %60 = vector.broadcast %cst_16 : f32 to vector<8x128xf32>
      %61 = arith.select %59, %40, %60 : vector<8x128xi1>, vector<8x128xf32>
      %62 = arith.addf %18, %61 : vector<8x128xf32>
      %c1_i32_17 = arith.constant 1 : i32
      %63 = vector.broadcast %c1_i32_17 : i32 to vector<8x128xi32>
      %64 = arith.cmpi eq, %57, %63 : vector<8x128xi32>
      %cst_18 = arith.constant 0.000000e+00 : f32
      %65 = vector.broadcast %cst_18 : f32 to vector<8x128xf32>
      %66 = arith.select %64, %40, %65 : vector<8x128xi1>, vector<8x128xf32>
      %67 = arith.addf %18, %66 : vector<8x128xf32>
      %c2_i32 = arith.constant 2 : i32
      %68 = vector.broadcast %c2_i32 : i32 to vector<8x128xi32>
      %69 = arith.cmpi eq, %57, %68 : vector<8x128xi32>
      %cst_19 = arith.constant 0.000000e+00 : f32
      %70 = vector.broadcast %cst_19 : f32 to vector<8x128xf32>
      %71 = arith.select %69, %40, %70 : vector<8x128xi1>, vector<8x128xf32>
      %72 = arith.addf %18, %71 : vector<8x128xf32>
      %c3_i32 = arith.constant 3 : i32
      %73 = vector.broadcast %c3_i32 : i32 to vector<8x128xi32>
      %74 = arith.cmpi eq, %57, %73 : vector<8x128xi32>
      %cst_20 = arith.constant 0.000000e+00 : f32
      %75 = vector.broadcast %cst_20 : f32 to vector<8x128xf32>
      %76 = arith.select %74, %40, %75 : vector<8x128xi1>, vector<8x128xf32>
      %77 = arith.addf %18, %76 : vector<8x128xf32>
      %c4_i32 = arith.constant 4 : i32
      %78 = vector.broadcast %c4_i32 : i32 to vector<8x128xi32>
      %79 = arith.cmpi eq, %57, %78 : vector<8x128xi32>
      %cst_21 = arith.constant 0.000000e+00 : f32
      %80 = vector.broadcast %cst_21 : f32 to vector<8x128xf32>
      %81 = arith.select %79, %40, %80 : vector<8x128xi1>, vector<8x128xf32>
      %82 = arith.addf %18, %81 : vector<8x128xf32>
      %c5_i32 = arith.constant 5 : i32
      %83 = vector.broadcast %c5_i32 : i32 to vector<8x128xi32>
      %84 = arith.cmpi eq, %57, %83 : vector<8x128xi32>
      %cst_22 = arith.constant 0.000000e+00 : f32
      %85 = vector.broadcast %cst_22 : f32 to vector<8x128xf32>
      %86 = arith.select %84, %40, %85 : vector<8x128xi1>, vector<8x128xf32>
      %87 = arith.addf %18, %86 : vector<8x128xf32>
      %c6_i32 = arith.constant 6 : i32
      %88 = vector.broadcast %c6_i32 : i32 to vector<8x128xi32>
      %89 = arith.cmpi eq, %57, %88 : vector<8x128xi32>
      %cst_23 = arith.constant 0.000000e+00 : f32
      %90 = vector.broadcast %cst_23 : f32 to vector<8x128xf32>
      %91 = arith.select %89, %40, %90 : vector<8x128xi1>, vector<8x128xf32>
      %92 = arith.addf %18, %91 : vector<8x128xf32>
      %c7_i32 = arith.constant 7 : i32
      %93 = vector.broadcast %c7_i32 : i32 to vector<8x128xi32>
      %94 = arith.cmpi eq, %57, %93 : vector<8x128xi32>
      %cst_24 = arith.constant 0.000000e+00 : f32
      %95 = vector.broadcast %cst_24 : f32 to vector<8x128xf32>
      %96 = arith.select %94, %40, %95 : vector<8x128xi1>, vector<8x128xf32>
      %97 = arith.addf %18, %96 : vector<8x128xf32>
      %c8_i32 = arith.constant 8 : i32
      %98 = vector.broadcast %c8_i32 : i32 to vector<8x128xi32>
      %99 = arith.cmpi eq, %57, %98 : vector<8x128xi32>
      %cst_25 = arith.constant 0.000000e+00 : f32
      %100 = vector.broadcast %cst_25 : f32 to vector<8x128xf32>
      %101 = arith.select %99, %40, %100 : vector<8x128xi1>, vector<8x128xf32>
      %102 = arith.addf %18, %101 : vector<8x128xf32>
      %c9_i32 = arith.constant 9 : i32
      %103 = vector.broadcast %c9_i32 : i32 to vector<8x128xi32>
      %104 = arith.cmpi eq, %57, %103 : vector<8x128xi32>
      %cst_26 = arith.constant 0.000000e+00 : f32
      %105 = vector.broadcast %cst_26 : f32 to vector<8x128xf32>
      %106 = arith.select %104, %40, %105 : vector<8x128xi1>, vector<8x128xf32>
      %107 = arith.addf %18, %106 : vector<8x128xf32>
      %c10_i32 = arith.constant 10 : i32
      %108 = vector.broadcast %c10_i32 : i32 to vector<8x128xi32>
      %109 = arith.cmpi eq, %57, %108 : vector<8x128xi32>
      %cst_27 = arith.constant 0.000000e+00 : f32
      %110 = vector.broadcast %cst_27 : f32 to vector<8x128xf32>
      %111 = arith.select %109, %40, %110 : vector<8x128xi1>, vector<8x128xf32>
      %112 = arith.addf %18, %111 : vector<8x128xf32>
      %c11_i32 = arith.constant 11 : i32
      %113 = vector.broadcast %c11_i32 : i32 to vector<8x128xi32>
      %114 = arith.cmpi eq, %57, %113 : vector<8x128xi32>
      %cst_28 = arith.constant 0.000000e+00 : f32
      %115 = vector.broadcast %cst_28 : f32 to vector<8x128xf32>
      %116 = arith.select %114, %40, %115 : vector<8x128xi1>, vector<8x128xf32>
      %117 = arith.addf %18, %116 : vector<8x128xf32>
      %c12_i32 = arith.constant 12 : i32
      %118 = vector.broadcast %c12_i32 : i32 to vector<8x128xi32>
      %119 = arith.cmpi eq, %57, %118 : vector<8x128xi32>
      %cst_29 = arith.constant 0.000000e+00 : f32
      %120 = vector.broadcast %cst_29 : f32 to vector<8x128xf32>
      %121 = arith.select %119, %40, %120 : vector<8x128xi1>, vector<8x128xf32>
      %122 = arith.addf %18, %121 : vector<8x128xf32>
      %c13_i32 = arith.constant 13 : i32
      %123 = vector.broadcast %c13_i32 : i32 to vector<8x128xi32>
      %124 = arith.cmpi eq, %57, %123 : vector<8x128xi32>
      %cst_30 = arith.constant 0.000000e+00 : f32
      %125 = vector.broadcast %cst_30 : f32 to vector<8x128xf32>
      %126 = arith.select %124, %40, %125 : vector<8x128xi1>, vector<8x128xf32>
      %127 = arith.addf %18, %126 : vector<8x128xf32>
      %c14_i32_31 = arith.constant 14 : i32
      %128 = vector.broadcast %c14_i32_31 : i32 to vector<8x128xi32>
      %129 = arith.cmpi eq, %57, %128 : vector<8x128xi32>
      %cst_32 = arith.constant 0.000000e+00 : f32
      %130 = vector.broadcast %cst_32 : f32 to vector<8x128xf32>
      %131 = arith.select %129, %40, %130 : vector<8x128xi1>, vector<8x128xf32>
      %132 = arith.addf %18, %131 : vector<8x128xf32>
      %c1_i32_33 = arith.constant 1 : i32
      %c0_34 = arith.constant 0 : index
      %c0_35 = arith.constant 0 : index
      %c0_36 = arith.constant 0 : index
      %133 = vector.load %arg5[%c0_34, %c0_35, %c0_36] : memref<15x8x128xf32, #tpu.memory_space<vmem>>, vector<1x8x128xf32>
      %134 = vector.shape_cast %133 : vector<1x8x128xf32> to vector<8x128xf32>
      %135 = arith.addf %134, %62 : vector<8x128xf32>
      %c0_37 = arith.constant 0 : index
      %c0_38 = arith.constant 0 : index
      %c0_39 = arith.constant 0 : index
      %136 = vector.load %arg5[%c0_37, %c0_38, %c0_39] : memref<15x8x128xf32, #tpu.memory_space<vmem>>, vector<1x8x128xf32>
      %137 = vector.shape_cast %136 : vector<1x8x128xf32> to vector<8x128xf32>
      %138 = vector.shape_cast %135 : vector<8x128xf32> to vector<1x8x128xf32>
      tpu.vector_store %arg5[%c0_37, %c0_38, %c0_39], %138 {strides = array<i32>} : memref<15x8x128xf32, #tpu.memory_space<vmem>>, vector<1x8x128xf32>,
      %c1 = arith.constant 1 : index
      %c0_40 = arith.constant 0 : index
      %c0_41 = arith.constant 0 : index
      %139 = vector.load %arg5[%c1, %c0_40, %c0_41] : memref<15x8x128xf32, #tpu.memory_space<vmem>>, vector<1x8x128xf32>
      %140 = vector.shape_cast %139 : vector<1x8x128xf32> to vector<8x128xf32>
      %141 = arith.addf %140, %67 : vector<8x128xf32>
      %c1_42 = arith.constant 1 : index
      %c0_43 = arith.constant 0 : index
      %c0_44 = arith.constant 0 : index
      %142 = vector.load %arg5[%c1_42, %c0_43, %c0_44] : memref<15x8x128xf32, #tpu.memory_space<vmem>>, vector<1x8x128xf32>
      %143 = vector.shape_cast %142 : vector<1x8x128xf32> to vector<8x128xf32>
      %144 = vector.shape_cast %141 : vector<8x128xf32> to vector<1x8x128xf32>
      tpu.vector_store %arg5[%c1_42, %c0_43, %c0_44], %144 {strides = array<i32>} : memref<15x8x128xf32, #tpu.memory_space<vmem>>, vector<1x8x128xf32>,
      %c2 = arith.constant 2 : index
      %c0_45 = arith.constant 0 : index
      %c0_46 = arith.constant 0 : index
      %145 = vector.load %arg5[%c2, %c0_45, %c0_46] : memref<15x8x128xf32, #tpu.memory_space<vmem>>, vector<1x8x128xf32>
      %146 = vector.shape_cast %145 : vector<1x8x128xf32> to vector<8x128xf32>
      %147 = arith.addf %146, %72 : vector<8x128xf32>
      %c2_47 = arith.constant 2 : index
      %c0_48 = arith.constant 0 : index
      %c0_49 = arith.constant 0 : index
      %148 = vector.load %arg5[%c2_47, %c0_48, %c0_49] : memref<15x8x128xf32, #tpu.memory_space<vmem>>, vector<1x8x128xf32>
      %149 = vector.shape_cast %148 : vector<1x8x128xf32> to vector<8x128xf32>
      %150 = vector.shape_cast %147 : vector<8x128xf32> to vector<1x8x128xf32>
      tpu.vector_store %arg5[%c2_47, %c0_48, %c0_49], %150 {strides = array<i32>} : memref<15x8x128xf32, #tpu.memory_space<vmem>>, vector<1x8x128xf32>,
      %c3 = arith.constant 3 : index
      %c0_50 = arith.constant 0 : index
      %c0_51 = arith.constant 0 : index
      %151 = vector.load %arg5[%c3, %c0_50, %c0_51] : memref<15x8x128xf32, #tpu.memory_space<vmem>>, vector<1x8x128xf32>
      %152 = vector.shape_cast %151 : vector<1x8x128xf32> to vector<8x128xf32>
      %153 = arith.addf %152, %77 : vector<8x128xf32>
      %c3_52 = arith.constant 3 : index
      %c0_53 = arith.constant 0 : index
      %c0_54 = arith.constant 0 : index
      %154 = vector.load %arg5[%c3_52, %c0_53, %c0_54] : memref<15x8x128xf32, #tpu.memory_space<vmem>>, vector<1x8x128xf32>
      %155 = vector.shape_cast %154 : vector<1x8x128xf32> to vector<8x128xf32>
      %156 = vector.shape_cast %153 : vector<8x128xf32> to vector<1x8x128xf32>
      tpu.vector_store %arg5[%c3_52, %c0_53, %c0_54], %156 {strides = array<i32>} : memref<15x8x128xf32, #tpu.memory_space<vmem>>, vector<1x8x128xf32>,
      %c4 = arith.constant 4 : index
      %c0_55 = arith.constant 0 : index
      %c0_56 = arith.constant 0 : index
      %157 = vector.load %arg5[%c4, %c0_55, %c0_56] : memref<15x8x128xf32, #tpu.memory_space<vmem>>, vector<1x8x128xf32>
      %158 = vector.shape_cast %157 : vector<1x8x128xf32> to vector<8x128xf32>
      %159 = arith.addf %158, %82 : vector<8x128xf32>
      %c4_57 = arith.constant 4 : index
      %c0_58 = arith.constant 0 : index
      %c0_59 = arith.constant 0 : index
      %160 = vector.load %arg5[%c4_57, %c0_58, %c0_59] : memref<15x8x128xf32, #tpu.memory_space<vmem>>, vector<1x8x128xf32>
      %161 = vector.shape_cast %160 : vector<1x8x128xf32> to vector<8x128xf32>
      %162 = vector.shape_cast %159 : vector<8x128xf32> to vector<1x8x128xf32>
      tpu.vector_store %arg5[%c4_57, %c0_58, %c0_59], %162 {strides = array<i32>} : memref<15x8x128xf32, #tpu.memory_space<vmem>>, vector<1x8x128xf32>,
      %c5 = arith.constant 5 : index
      %c0_60 = arith.constant 0 : index
      %c0_61 = arith.constant 0 : index
      %163 = vector.load %arg5[%c5, %c0_60, %c0_61] : memref<15x8x128xf32, #tpu.memory_space<vmem>>, vector<1x8x128xf32>
      %164 = vector.shape_cast %163 : vector<1x8x128xf32> to vector<8x128xf32>
      %165 = arith.addf %164, %87 : vector<8x128xf32>
      %c5_62 = arith.constant 5 : index
      %c0_63 = arith.constant 0 : index
      %c0_64 = arith.constant 0 : index
      %166 = vector.load %arg5[%c5_62, %c0_63, %c0_64] : memref<15x8x128xf32, #tpu.memory_space<vmem>>, vector<1x8x128xf32>
      %167 = vector.shape_cast %166 : vector<1x8x128xf32> to vector<8x128xf32>
      %168 = vector.shape_cast %165 : vector<8x128xf32> to vector<1x8x128xf32>
      tpu.vector_store %arg5[%c5_62, %c0_63, %c0_64], %168 {strides = array<i32>} : memref<15x8x128xf32, #tpu.memory_space<vmem>>, vector<1x8x128xf32>,
      %c6 = arith.constant 6 : index
      %c0_65 = arith.constant 0 : index
      %c0_66 = arith.constant 0 : index
      %169 = vector.load %arg5[%c6, %c0_65, %c0_66] : memref<15x8x128xf32, #tpu.memory_space<vmem>>, vector<1x8x128xf32>
      %170 = vector.shape_cast %169 : vector<1x8x128xf32> to vector<8x128xf32>
      %171 = arith.addf %170, %92 : vector<8x128xf32>
      %c6_67 = arith.constant 6 : index
      %c0_68 = arith.constant 0 : index
      %c0_69 = arith.constant 0 : index
      %172 = vector.load %arg5[%c6_67, %c0_68, %c0_69] : memref<15x8x128xf32, #tpu.memory_space<vmem>>, vector<1x8x128xf32>
      %173 = vector.shape_cast %172 : vector<1x8x128xf32> to vector<8x128xf32>
      %174 = vector.shape_cast %171 : vector<8x128xf32> to vector<1x8x128xf32>
      tpu.vector_store %arg5[%c6_67, %c0_68, %c0_69], %174 {strides = array<i32>} : memref<15x8x128xf32, #tpu.memory_space<vmem>>, vector<1x8x128xf32>,
      %c7 = arith.constant 7 : index
      %c0_70 = arith.constant 0 : index
      %c0_71 = arith.constant 0 : index
      %175 = vector.load %arg5[%c7, %c0_70, %c0_71] : memref<15x8x128xf32, #tpu.memory_space<vmem>>, vector<1x8x128xf32>
      %176 = vector.shape_cast %175 : vector<1x8x128xf32> to vector<8x128xf32>
      %177 = arith.addf %176, %97 : vector<8x128xf32>
      %c7_72 = arith.constant 7 : index
      %c0_73 = arith.constant 0 : index
      %c0_74 = arith.constant 0 : index
      %178 = vector.load %arg5[%c7_72, %c0_73, %c0_74] : memref<15x8x128xf32, #tpu.memory_space<vmem>>, vector<1x8x128xf32>
      %179 = vector.shape_cast %178 : vector<1x8x128xf32> to vector<8x128xf32>
      %180 = vector.shape_cast %177 : vector<8x128xf32> to vector<1x8x128xf32>
      tpu.vector_store %arg5[%c7_72, %c0_73, %c0_74], %180 {strides = array<i32>} : memref<15x8x128xf32, #tpu.memory_space<vmem>>, vector<1x8x128xf32>,
      %c8 = arith.constant 8 : index
      %c0_75 = arith.constant 0 : index
      %c0_76 = arith.constant 0 : index
      %181 = vector.load %arg5[%c8, %c0_75, %c0_76] : memref<15x8x128xf32, #tpu.memory_space<vmem>>, vector<1x8x128xf32>
      %182 = vector.shape_cast %181 : vector<1x8x128xf32> to vector<8x128xf32>
      %183 = arith.addf %182, %102 : vector<8x128xf32>
      %c8_77 = arith.constant 8 : index
      %c0_78 = arith.constant 0 : index
      %c0_79 = arith.constant 0 : index
      %184 = vector.load %arg5[%c8_77, %c0_78, %c0_79] : memref<15x8x128xf32, #tpu.memory_space<vmem>>, vector<1x8x128xf32>
      %185 = vector.shape_cast %184 : vector<1x8x128xf32> to vector<8x128xf32>
      %186 = vector.shape_cast %183 : vector<8x128xf32> to vector<1x8x128xf32>
      tpu.vector_store %arg5[%c8_77, %c0_78, %c0_79], %186 {strides = array<i32>} : memref<15x8x128xf32, #tpu.memory_space<vmem>>, vector<1x8x128xf32>,
      %c9 = arith.constant 9 : index
      %c0_80 = arith.constant 0 : index
      %c0_81 = arith.constant 0 : index
      %187 = vector.load %arg5[%c9, %c0_80, %c0_81] : memref<15x8x128xf32, #tpu.memory_space<vmem>>, vector<1x8x128xf32>
      %188 = vector.shape_cast %187 : vector<1x8x128xf32> to vector<8x128xf32>
      %189 = arith.addf %188, %107 : vector<8x128xf32>
      %c9_82 = arith.constant 9 : index
      %c0_83 = arith.constant 0 : index
      %c0_84 = arith.constant 0 : index
      %190 = vector.load %arg5[%c9_82, %c0_83, %c0_84] : memref<15x8x128xf32, #tpu.memory_space<vmem>>, vector<1x8x128xf32>
      %191 = vector.shape_cast %190 : vector<1x8x128xf32> to vector<8x128xf32>
      %192 = vector.shape_cast %189 : vector<8x128xf32> to vector<1x8x128xf32>
      tpu.vector_store %arg5[%c9_82, %c0_83, %c0_84], %192 {strides = array<i32>} : memref<15x8x128xf32, #tpu.memory_space<vmem>>, vector<1x8x128xf32>,
      %c10 = arith.constant 10 : index
      %c0_85 = arith.constant 0 : index
      %c0_86 = arith.constant 0 : index
      %193 = vector.load %arg5[%c10, %c0_85, %c0_86] : memref<15x8x128xf32, #tpu.memory_space<vmem>>, vector<1x8x128xf32>
      %194 = vector.shape_cast %193 : vector<1x8x128xf32> to vector<8x128xf32>
      %195 = arith.addf %194, %112 : vector<8x128xf32>
      %c10_87 = arith.constant 10 : index
      %c0_88 = arith.constant 0 : index
      %c0_89 = arith.constant 0 : index
      %196 = vector.load %arg5[%c10_87, %c0_88, %c0_89] : memref<15x8x128xf32, #tpu.memory_space<vmem>>, vector<1x8x128xf32>
      %197 = vector.shape_cast %196 : vector<1x8x128xf32> to vector<8x128xf32>
      %198 = vector.shape_cast %195 : vector<8x128xf32> to vector<1x8x128xf32>
      tpu.vector_store %arg5[%c10_87, %c0_88, %c0_89], %198 {strides = array<i32>} : memref<15x8x128xf32, #tpu.memory_space<vmem>>, vector<1x8x128xf32>,
      %c11 = arith.constant 11 : index
      %c0_90 = arith.constant 0 : index
      %c0_91 = arith.constant 0 : index
      %199 = vector.load %arg5[%c11, %c0_90, %c0_91] : memref<15x8x128xf32, #tpu.memory_space<vmem>>, vector<1x8x128xf32>
      %200 = vector.shape_cast %199 : vector<1x8x128xf32> to vector<8x128xf32>
      %201 = arith.addf %200, %117 : vector<8x128xf32>
      %c11_92 = arith.constant 11 : index
      %c0_93 = arith.constant 0 : index
      %c0_94 = arith.constant 0 : index
      %202 = vector.load %arg5[%c11_92, %c0_93, %c0_94] : memref<15x8x128xf32, #tpu.memory_space<vmem>>, vector<1x8x128xf32>
      %203 = vector.shape_cast %202 : vector<1x8x128xf32> to vector<8x128xf32>
      %204 = vector.shape_cast %201 : vector<8x128xf32> to vector<1x8x128xf32>
      tpu.vector_store %arg5[%c11_92, %c0_93, %c0_94], %204 {strides = array<i32>} : memref<15x8x128xf32, #tpu.memory_space<vmem>>, vector<1x8x128xf32>,
      %c12 = arith.constant 12 : index
      %c0_95 = arith.constant 0 : index
      %c0_96 = arith.constant 0 : index
      %205 = vector.load %arg5[%c12, %c0_95, %c0_96] : memref<15x8x128xf32, #tpu.memory_space<vmem>>, vector<1x8x128xf32>
      %206 = vector.shape_cast %205 : vector<1x8x128xf32> to vector<8x128xf32>
      %207 = arith.addf %206, %122 : vector<8x128xf32>
      %c12_97 = arith.constant 12 : index
      %c0_98 = arith.constant 0 : index
      %c0_99 = arith.constant 0 : index
      %208 = vector.load %arg5[%c12_97, %c0_98, %c0_99] : memref<15x8x128xf32, #tpu.memory_space<vmem>>, vector<1x8x128xf32>
      %209 = vector.shape_cast %208 : vector<1x8x128xf32> to vector<8x128xf32>
      %210 = vector.shape_cast %207 : vector<8x128xf32> to vector<1x8x128xf32>
      tpu.vector_store %arg5[%c12_97, %c0_98, %c0_99], %210 {strides = array<i32>} : memref<15x8x128xf32, #tpu.memory_space<vmem>>, vector<1x8x128xf32>,
      %c13 = arith.constant 13 : index
      %c0_100 = arith.constant 0 : index
      %c0_101 = arith.constant 0 : index
      %211 = vector.load %arg5[%c13, %c0_100, %c0_101] : memref<15x8x128xf32, #tpu.memory_space<vmem>>, vector<1x8x128xf32>
      %212 = vector.shape_cast %211 : vector<1x8x128xf32> to vector<8x128xf32>
      %213 = arith.addf %212, %127 : vector<8x128xf32>
      %c13_102 = arith.constant 13 : index
      %c0_103 = arith.constant 0 : index
      %c0_104 = arith.constant 0 : index
      %214 = vector.load %arg5[%c13_102, %c0_103, %c0_104] : memref<15x8x128xf32, #tpu.memory_space<vmem>>, vector<1x8x128xf32>
      %215 = vector.shape_cast %214 : vector<1x8x128xf32> to vector<8x128xf32>
      %216 = vector.shape_cast %213 : vector<8x128xf32> to vector<1x8x128xf32>
      tpu.vector_store %arg5[%c13_102, %c0_103, %c0_104], %216 {strides = array<i32>} : memref<15x8x128xf32, #tpu.memory_space<vmem>>, vector<1x8x128xf32>,
      %c14 = arith.constant 14 : index
      %c0_105 = arith.constant 0 : index
      %c0_106 = arith.constant 0 : index
      %217 = vector.load %arg5[%c14, %c0_105, %c0_106] : memref<15x8x128xf32, #tpu.memory_space<vmem>>, vector<1x8x128xf32>
      %218 = vector.shape_cast %217 : vector<1x8x128xf32> to vector<8x128xf32>
      %219 = arith.addf %218, %132 : vector<8x128xf32>
      %c14_107 = arith.constant 14 : index
      %c0_108 = arith.constant 0 : index
      %c0_109 = arith.constant 0 : index
      %220 = vector.load %arg5[%c14_107, %c0_108, %c0_109] : memref<15x8x128xf32, #tpu.memory_space<vmem>>, vector<1x8x128xf32>
      %221 = vector.shape_cast %220 : vector<1x8x128xf32> to vector<8x128xf32>
      %222 = vector.shape_cast %219 : vector<8x128xf32> to vector<1x8x128xf32>
      tpu.vector_store %arg5[%c14_107, %c0_108, %c0_109], %222 {strides = array<i32>} : memref<15x8x128xf32, #tpu.memory_space<vmem>>, vector<1x8x128xf32>,
    } else {
    }
    %c0_i32_4 = arith.constant 0 : i32
    %15 = arith.cmpi eq, %arg1, %c0_i32_4 : i32
    %16 = arith.extui %15 : i1 to i32
    %c0_i32_5 = arith.constant 0 : i32
    %17 = arith.cmpi ne, %16, %c0_i32_5 : i32
    scf.if %17 {
      %c0 = arith.constant 0 : index
      %c0_6 = arith.constant 0 : index
      %c0_7 = arith.constant 0 : index
      %18 = vector.load %arg5[%c0, %c0_6, %c0_7] : memref<15x8x128xf32, #tpu.memory_space<vmem>>, vector<15x8x128xf32>
      %cst = arith.constant dense<0.000000e+00> : vector<15x8xf32>
      %19 = vector.multi_reduction <add>, %18, %cst [2] : vector<15x8x128xf32> to vector<15x8xf32>
      %c0_8 = arith.constant 0 : index
      %c0_9 = arith.constant 0 : index
      %c0_10 = arith.constant 0 : index
      %20 = vector.load %arg4[%c0_8, %c0_9, %c0_10] : memref<1x15x8xf32, #tpu.memory_space<vmem>>, vector<1x15x8xf32>
      %21 = vector.shape_cast %20 : vector<1x15x8xf32> to vector<15x8xf32>
      %22 = vector.shape_cast %19 : vector<15x8xf32> to vector<1x15x8xf32>
      tpu.vector_store %arg4[%c0_8, %c0_9, %c0_10], %22 {strides = array<i32>} : memref<1x15x8xf32, #tpu.memory_space<vmem>>, vector<1x15x8xf32>,
    } else {
    }
    return
  }
  func.func @transform_0(%arg0: i32, %arg1: i32) -> (i32, i32) {
    %c1_i32 = arith.constant 1 : i32
    %0 = arith.muli %arg0, %c1_i32 : i32
    %1 = arith.addi %0, %arg1 : i32
    %c0_i32 = arith.constant 0 : i32
    %c0_i32_0 = arith.constant 0 : i32
    return %c0_i32, %1 : i32, i32
  }
  func.func @transform_1(%arg0: i32, %arg1: i32) -> (i32, i32) {
    %c1_i32 = arith.constant 1 : i32
    %0 = arith.muli %arg0, %c1_i32 : i32
    %1 = arith.addi %0, %arg1 : i32
    %c0_i32 = arith.constant 0 : i32
    %c0_i32_0 = arith.constant 0 : i32
    return %c0_i32, %1 : i32, i32
  }
  func.func @transform_2(%arg0: i32, %arg1: i32) -> (i32, i32, i32) {
    %c0_i32 = arith.constant 0 : i32
    %c0_i32_0 = arith.constant 0 : i32
    %c0_i32_1 = arith.constant 0 : i32
    return %arg0, %c0_i32, %c0_i32_0 : i32, i32, i32
  }
}

</mosaic_0001>

<bundles_post_ra>
// kernel: tpu_custom_call.1
= control target key start
LH: loop header
LB: loop body
LE: loop exit
PB: predicated region body
PF: predicated region fallthrough
CT: control target
= control target key end

     0   :  { %7 = vsyncpa [#allocation4], 0  ;;  %s553_s9 = smov [#allocation3]   ;;  %s620_s0 = inlined_call_operand.hbm [shape: f32[8,64], index: 0, kind: input, shape index: {}]   ;;  %s621_s1 = inlined_call_operand.vmem [shape: s32[1,64], index: 1, kind: input, shape index: {}]   ;;  %s622_s2 = inlined_call_operand.vmem [shape: f32[1,15,8], index: 2, kind: output, shape index: {}]  }
   0x1   :  { %s17_s10 = sshll.u32 %s553_s9, 4  ;;  %s529_s13 = scalar_lea.hbm %s620_s0, 128  ;;  %s18_s10 = int_to_ptr.vmem [resolvable:$true] %s17_s10 }
   0x2   :  { %p530_p0 = scmp.ne.s32.totalorder %s620_s0, %s529_s13  ;;  %p533_p1 = scmp.lt.u32.totalorder %s529_s13, %s620_s0 }
   0x4   :  { %p535_p2 = pnand %p533_p1, %p530_p0 }
   0x6   :  { %538 = shalt.err (!%p535_p2)
}
   0x7   :  { %s539_s18 = scalar_lea.vmem %s18_s10, 128  ;;  %p544_p4 = scmp.lt.s32.totalorder %s18_s10, %s18_s10 }
   0x8   :  { %p540_p3 = scmp.ne.s32.totalorder %s18_s10, %s539_s18  ;;  %p545_p5 = scmp.lt.s32.totalorder %s539_s18, %s539_s18 }
   0xa   :  { %p546_p6 = por %p545_p5, %p544_p4 }
   0xc   :  { %p547_p7 = pnand %p546_p6, %p540_p3 }
   0xe   :  { %550 = shalt.err (!%p547_p7)
}
   0xf   :  { %20 = dma.hbm_to_vmem [thread:$0]  %s620_s0, 128, %s18_s10, [#allocation4]  }
  0x10   :  { %551 = dma.done.wait [#allocation4], 128  }
  0x11   :  { %552 = vsyncadd [#allocation4], 4294967168  ;;  %v62_v0 = vlaneseq  ;;  %v213_v4 = vld [vmem:[#allocation3] sm:$0xff]  ;;  %v554_v27 = vmov 0.0  }
  0x12   :  { %v215_v5 = vrot.slane %v213_v4, 4  ;;  %v518_v23 = vld [vmem:[%s621_s1] ss:$0 sm:$0xff] }
  0x13   :  { %v63_v1 = vshrl.u32 %v62_v0, 7  ;;  %v65_v2 = vand.u32 127, %v62_v0 }
  0x14   :  { %v216_v6 = vmax.f32 %v213_v4, %v215_v5 }
  0x15   :  { %v582_v3 = vsub.s32 %v65_v2, %v63_v1  ;;  %vm237_vm0 = vcmp.eq.s32.totalorder %v518_v23, %v63_v1  ;;  %vm250_vm1 = vcmp.lt.s32.totalorder %v65_v2, 64 }
  0x16   :  { %v217_v7 = vrot.slane %v216_v6, 2  ;;  %v519_v28 = vsel %vm237_vm0, 1.0, %v554_v27 }
  0x18   :  { %v218_v8 = vmax.f32 %v216_v6, %v217_v7 }
  0x1a   :  { %v219_v9 = vrot.slane %v218_v8, 1 }
  0x1c   :  { %v220_v10 = vmax.f32 %v218_v8, %v219_v9 }
  0x1e   :  { %v221_v11 = vsub.f32 %v213_v4, %v220_v10 }
  0x20   :  { %v222_v12 = vmul.f32 1.442695, %v221_v11 }
  0x22   :  { %525 = vpow2.f32 %v222_v12 }
  0x2c   :  { %v526_v13 = vpop.eup %525 }
  0x2d   :  { %v224_v14 = vrot.slane %v526_v13, 4 }
  0x2f   :  { %v225_v15 = vadd.f32 %v526_v13, %v224_v14 }
  0x31   :  { %v226_v16 = vrot.slane %v225_v15, 2 }
  0x33   :  { %v227_v17 = vadd.f32 %v226_v16, %v225_v15 }
  0x35   :  { %v228_v18 = vrot.slane %v227_v17, 1 }
  0x37   :  { %v229_v19 = vadd.f32 %v228_v18, %v227_v17 }
  0x39   :  { %527 = vrcp.f32 %v229_v19 }
  0x43   :  { %v528_v20 = vpop.eup %527 }
  0x44   :  { %v232_v21 = vmul.f32 %v528_v20, %v526_v13 }
  0x46   :  { %v241_v22 = vmul.f32 15.0, %v232_v21  ;;  %v240_v30 = vsub.f32 %v232_v21, %v519_v28 }
  0x48   :  { %v242_v24 = vceil.f32 %v241_v22 }
  0x4a   :  { %v521_v25 = vtrunc.f32 %v242_v24 }
  0x4c   :  { %v522_v26 = vcvt.f32.s32 %v521_v25 }
  0x4e   :  { %v520_v29 = vadd.s32 4294967295, %v522_v26 }
  0x50   :  { %vm245_vm2 = vcmp.lt.s32.totalorder %v520_v29, 14 }
  0x51   :  { %v246_v31 = vsel %vm245_vm2, %v520_v29, 14  ;;  %vm481_vm2 = vcmask 1041409  }
  0x52   :  { %v253_v32 = vsel %vm250_vm1, %v246_v31, 4294967295 }
  0x53   :  { %vm260_vm3 = vcmp.eq.s32.totalorder %v253_v32, 2  ;;  %vm254_vm4 = vcmp.eq.s32.totalorder %v253_v32, 0  ;;  %vm278_vm5 = vcmp.eq.s32.totalorder %v253_v32, 8  ;;  %vm257_vm6 = vcmp.eq.s32.totalorder %v253_v32, 1 }
  0x54   :  { %v261_v33 = vsel %vm260_vm3, %v240_v30, 0.0  ;;  %v255_v34 = vsel %vm254_vm4, %v240_v30, 0.0  ;;  %v279_v35 = vsel %vm278_vm5, %v240_v30, 0.0  ;;  %v258_v36 = vsel %vm257_vm6, %v240_v30, 0.0 }
  0x55   :  { %380 = vadd.xlane.f32.xlu1 %v261_v33  ;;  %376 = vadd.xlane.f32.xlu0 %v255_v34  ;;  %vm263_vm7 = vcmp.eq.s32.totalorder %v253_v32, 3  ;;  %vm281_vm8 = vcmp.eq.s32.totalorder %v253_v32, 9  ;;  %vm266_vm9 = vcmp.eq.s32.totalorder %v253_v32, 4  ;;  %vm284_vm10 = vcmp.eq.s32.totalorder %v253_v32, 10 }
  0x56   :  { %v264_v37 = vsel %vm263_vm7, %v240_v30, 0.0  ;;  %v282_v38 = vsel %vm281_vm8, %v240_v30, 0.0  ;;  %v267_v39 = vsel %vm266_vm9, %v240_v30, 0.0  ;;  %v285_v40 = vsel %vm284_vm10, %v240_v30, 0.0 }
  0x57   :  { %vm269_vm11 = vcmp.eq.s32.totalorder %v253_v32, 5  ;;  %vm287_vm12 = vcmp.eq.s32.totalorder %v253_v32, 11  ;;  %vm272_vm13 = vcmp.eq.s32.totalorder %v253_v32, 6  ;;  %vm290_vm14 = vcmp.eq.s32.totalorder %v253_v32, 12 }
  0x58   :  { %v270_v41 = vsel %vm269_vm11, %v240_v30, 0.0  ;;  %v288_v42 = vsel %vm287_vm12, %v240_v30, 0.0  ;;  %v273_v43 = vsel %vm272_vm13, %v240_v30, 0.0  ;;  %v291_v44 = vsel %vm290_vm14, %v240_v30, 0.0 }
  0x59   :  { %392 = vadd.xlane.f32.xlu1 %v279_v35  ;;  %378 = vadd.xlane.f32.xlu0 %v258_v36  ;;  %vm275_vm15 = vcmp.eq.s32.totalorder %v253_v32, 7  ;;  %vm293_vm0 = vcmp.eq.s32.totalorder %v253_v32, 13  ;;  %vm296_vm1 = vcmp.eq.s32.totalorder %v253_v32, 14  ;;  %vm483_vm3 = vcmask 1042434  }
  0x5a   :  { %v276_v45 = vsel %vm275_vm15, %v240_v30, 0.0  ;;  %v294_v46 = vsel %vm293_vm0, %v240_v30, 0.0  ;;  %v297_v47 = vsel %vm296_vm1, %v240_v30, 0.0  ;;  %vm485_vm4 = vcmask 1043459  }
  0x5b   :  { %vm487_vm5 = vcmask 1044484   ;;  %vm489_vm6 = vcmask 1045509   ;;  %vm491_vm7 = vcmask 1046534   ;;  %vm493_vm8 = vcmask 1047559  }
  0x5c   :  { %vm503_vm9 = vcmask 64512   ;;  %vm505_vm10 = vcmask 63488  }
  0x5d   :  { %382 = vadd.xlane.f32.xlu1 %v264_v37  ;;  %394 = vadd.xlane.f32.xlu0 %v282_v38 }
  0x61   :  { %384 = vadd.xlane.f32.xlu1 %v267_v39  ;;  %396 = vadd.xlane.f32.xlu0 %v285_v40 }
  0x65   :  { %386 = vadd.xlane.f32.xlu1 %v270_v41  ;;  %398 = vadd.xlane.f32.xlu0 %v288_v42 }
  0x69   :  { %388 = vadd.xlane.f32.xlu1 %v273_v43  ;;  %400 = vadd.xlane.f32.xlu0 %v291_v44 }
  0x6d   :  { %390 = vadd.xlane.f32.xlu1 %v276_v45  ;;  %402 = vadd.xlane.f32.xlu0 %v294_v46 }
  0x71   :  { %404 = vadd.xlane.f32.xlu0 %v297_v47 }
  0xe2   :  { %v381_v48 = vpop.xlane.xlu1 %380  ;;  %v377_v49 = vpop.xlane.xlu0 %376 }
  0xe3   :  { %v424_v59 = vrot.slane %v377_v49, %v582_v3  ;;  %v432_v60 = vrot.slane %v381_v48, %v582_v3 }
  0xe6   :  { %v393_v50 = vpop.xlane.xlu1 %392  ;;  %v379_v51 = vpop.xlane.xlu0 %378 }
  0xe7   :  { %v428_v56 = vrot.slane %v379_v51, %v582_v3  ;;  %v456_v4 = vrot.slane %v393_v50, %v582_v3 }
  0xe9   :  { %v482_v61 = vsel %vm481_vm2, %v428_v56, %v424_v59 }
  0xea   :  { %v383_v52 = vpop.xlane.xlu1 %382  ;;  %v395_v53 = vpop.xlane.xlu0 %394  ;;  %v484_v5 = vsel %vm483_vm3, %v432_v60, %v482_v61 }
  0xeb   :  { %v436_v62 = vrot.slane %v383_v52, %v582_v3  ;;  %v460_v6 = vrot.slane %v395_v53, %v582_v3 }
  0xed   :  { %v486_v8 = vsel %vm485_vm4, %v436_v62, %v484_v5  ;;  %v495_v17 = vsel %vm481_vm2, %v460_v6, %v456_v4 }
  0xee   :  { %v385_v54 = vpop.xlane.xlu1 %384  ;;  %v397_v55 = vpop.xlane.xlu0 %396 }
  0xef   :  { %v440_v63 = vrot.slane %v385_v54, %v582_v3  ;;  %v464_v9 = vrot.slane %v397_v55, %v582_v3 }
  0xf1   :  { %v488_v10 = vsel %vm487_vm5, %v440_v63, %v486_v8  ;;  %v496_v20 = vsel %vm483_vm3, %v464_v9, %v495_v17 }
  0xf2   :  { %v387_v57 = vpop.xlane.xlu1 %386  ;;  %v399_v58 = vpop.xlane.xlu0 %398 }
  0xf3   :  { %v444_v2 = vrot.slane %v387_v57, %v582_v3  ;;  %v468_v11 = vrot.slane %v399_v58, %v582_v3 }
  0xf5   :  { %v490_v14 = vsel %vm489_vm6, %v444_v2, %v488_v10  ;;  %v497_v22 = vsel %vm485_vm4, %v468_v11, %v496_v20 }
  0xf6   :  { %v389_v0 = vpop.xlane.xlu1 %388  ;;  %v401_v1 = vpop.xlane.xlu0 %400 }
  0xf7   :  { %v448_v7 = vrot.slane %v389_v0, %v582_v3  ;;  %v472_v15 = vrot.slane %v401_v1, %v582_v3 }
  0xf9   :  { %v492_v18 = vsel %vm491_vm7, %v448_v7, %v490_v14  ;;  %v498_v24 = vsel %vm487_vm5, %v472_v15, %v497_v22 }
  0xfa   :  { %v391_v12 = vpop.xlane.xlu1 %390  ;;  %v403_v13 = vpop.xlane.xlu0 %402 }
  0xfb   :  { %v452_v16 = vrot.slane %v391_v12, %v582_v3  ;;  %v476_v19 = vrot.slane %v403_v13, %v582_v3 }
  0xfd   :  { %v494_v21 = vsel %vm493_vm8, %v452_v16, %v492_v18  ;;  %v499_v26 = vsel %vm489_vm6, %v476_v19, %v498_v24 }
  0xfe   :  { %504 = vst.msk [vmem:[%s622_s2] sm:$0xff] %vm503_vm9, %v494_v21  ;;  %v405_v23 = vpop.xlane.xlu0 %404 }
  0xff   :  { %v480_v25 = vrot.slane %v405_v23, %v582_v3 }
 0x101   :  { %v500_v27 = vsel %vm491_vm7, %v480_v25, %v499_v26 }
 0x102   :  { %506 = vst.msk [vmem:[%s622_s2 + $0x8] sm:$0x7f] %vm505_vm10, %v500_v27 }
 0x103   :  { %511 = vsyncpa [#allocation4], 1 }

</bundles_post_ra>
